<compile_context>
chip_gen: v7x
topology: tpu7x:2x2x1
jax: 0.10.0
libtpu: 0.0.40
codegen_flags: <defaults>
</compile_context>

<pallas_src>
import functools

import jax
import jax.numpy as jnp
from jax.experimental import pallas as pl
from jax.experimental.pallas import tpu as pltpu


SIGN_COLS = 8  # columns of the stationary sign matrix; only column 0 is stored


def _round_up(x: int, m: int) -> int:
    return ((x + m - 1) // m) * m


def _magnetization_kernel(states_ref, signs_ref, out_ref, *, inv_n: float,
                          compute_dtype):
    """out[b, 0] = |sum_f states[b, f] * signs[f]| / N^2 for one batch tile.

    states_ref : (block_rows, F)   native-dtype input tile
    signs_ref  : (F, SIGN_COLS)    +/-1 sign matrix, resident across the grid
    out_ref    : (block_rows, 1)   float32 output tile
    """
    x = states_ref[...]
    if x.dtype != compute_dtype:
        # Only taken for int / fp8 inputs (v7x MXU has no int path); 0/1 spin
        # indicators are exact in bf16.
        x = x.astype(compute_dtype)
    # Canonical MXU orientation: streamed LHS, tiny stationary RHS, f32 acc.
    sums = jnp.dot(x, signs_ref[...], preferred_element_type=jnp.float32)
    out_ref[...] = jnp.abs(sums[:, 0:1]) * inv_n


def ising_magnetization(states: jax.Array, N: int, *, block_rows: int | None = None
                        ) -> jax.Array:
    """states: [B, 2*N*N]  ->  magnetizations: [B, 1] float32."""
    B, F = states.shape
    n_sq = N * N
    if F != 2 * n_sq:
        raise ValueError(f"expected last dim {2 * n_sq}, got {F}")

    in_dtype = states.dtype
    itemsize = jnp.dtype(in_dtype).itemsize
    if jnp.issubdtype(in_dtype, jnp.floating) and itemsize >= 2:
        compute_dtype = in_dtype          # fed straight to the MXU, no temp
        cast_bytes = 0
    else:
        compute_dtype = jnp.bfloat16      # exact for 0/1 spins (int8 / fp8 path)
        cast_bytes = 2                    # in-kernel bf16 temp, counted below

    # Minimum sublane alignment per input dtype width (f32:8, bf16:16, int8:32).
    sub = {1: 32, 2: 16}.get(itemsize, 8)

    # Per-generation VMEM budget; fallback is the v7x-safe (64 MiB VMEM) setting.
    try:
        vmem_cap = int(getattr(pltpu.get_tpu_info(), "vmem_capacity_bytes",
                               64 << 20))
    except Exception:
        vmem_cap = 64 << 20
    if vmem_cap >= (96 << 20):            # v5e / v6e: 128 MiB physical VMEM
        input_budget = 48 << 20
        vmem_limit = 64 << 20
    else:                                 # v7x: 64 MiB physical VMEM per TC
        input_budget = 36 << 20
        vmem_limit = 48 << 20

    # Live VMEM per batch row: double-buffered native input + optional cast temp.
    row_bytes = F * (2 * itemsize + cast_bytes)
    max_rows = max(sub, ((input_budget // row_bytes) // sub) * sub)

    if block_rows is None:
        if B <= max_rows:
            # Whole batch fits in one tile; still split into two sublane-aligned
            # blocks so v7x megacore has >=2 grid steps to shard.
            block_rows = B if B < 2 * sub else _round_up(pl.cdiv(B, 2), sub)
        else:
            block_rows = max_rows
    else:
        block_rows = max(sub, min(_round_up(block_rows, sub), _round_up(B, sub)))
    num_blocks = pl.cdiv(B, block_rows)

    # +/-1 sign matrix over the feature axis (col < N^2 -> +1, else -1), built
    # once here (not per grid step) and kept resident in VMEM across the grid.
    signs_t = jnp.where(jnp.arange(F)[:, None] < n_sq, 1.0, -1.0)
    signs_t = jnp.broadcast_to(signs_t, (F, SIGN_COLS)).astype(compute_dtype)

    kernel = functools.partial(
        _magnetization_kernel, inv_n=float(1.0 / n_sq), compute_dtype=compute_dtype)

    out = pl.pallas_call(
        kernel,
        out_shape=jax.ShapeDtypeStruct((B, 1), jnp.float32),
        grid_spec=pltpu.PrefetchScalarGridSpec(
            num_scalar_prefetch=0,
            grid=(num_blocks,),
            in_specs=[
                pl.BlockSpec((block_rows, F), lambda i: (i, 0)),
                pl.BlockSpec((F, SIGN_COLS), lambda i: (0, 0)),  # resident
            ],
            out_specs=pl.BlockSpec((block_rows, 1), lambda i: (i, 0)),
        ),
        compiler_params=pltpu.CompilerParams(
            dimension_semantics=("parallel",),   # v7x: shard batch grid over TCs
            vmem_limit_bytes=vmem_limit,
        ),
        cost_estimate=pl.CostEstimate(
            flops=2 * B * F * SIGN_COLS,
            transcendentals=0,
            bytes_accessed=(B * F * itemsize
                            + F * SIGN_COLS * jnp.dtype(compute_dtype).itemsize
                            + B * 4),
        ),
    )(states, signs_t)

    return out  # float32, matching the float output of the PyTorch module


def ising_magnetization_ref(states: jax.Array, N: int) -> jax.Array:
    n_sq = N * N
    s = states.astype(jnp.float32)
    spins = s[..., :n_sq] - s[..., n_sq:]
    return jnp.abs(jnp.mean(spins, axis=-1, keepdims=True))


if __name__ == "__main__":
    key = jax.random.PRNGKey(0)

    def make_states(k, B, N, dtype=jnp.float32):
        n_sq = N * N
        up = (jax.random.uniform(k, (B, n_sq)) > 0.5).astype(dtype)
        return jnp.concatenate([up, (1 - up).astype(dtype)], axis=-1)  # [B, 2*N*N]

    # (N, B, block_rows override, dtype)
    cases = [
        (8, 40, None, jnp.float32),    # auto tiling -> 2 blocks (megacore split)
        (8, 40, 16, jnp.float32),      # forced small tiles -> ragged tail (16+16+8)
        (10, 24, 8, jnp.float32),      # n_sq=100: feature dim not a multiple of 128
        (8, 8, None, jnp.float32),     # tiny batch -> single full-batch block
        (8, 64, None, jnp.bfloat16),   # native bf16 MXU feed, exact f32 accumulation
    ]
    for idx, (N, B, blk, dt) in enumerate(cases):
        k = jax.random.fold_in(key, idx)
        states = make_states(k, B, N, dt)
        kwargs = {} if blk is None else {"block_rows": blk}
        out = jax.block_until_ready(ising_magnetization(states, N, **kwargs))
        ref = ising_magnetization_ref(states, N)
        assert out.shape == (B, 1), out.shape
        assert out.dtype == jnp.float32, out.dtype
        assert jnp.allclose(out, ref, atol=1e-6, rtol=1e-6), (N, B, dt, out, ref)

    print("KERNEL_OK")
</pallas_src>

<mosaic_0001>
module attributes {stable_mosaic.version = 11 : i64} {
  func.func @_magnetization_kernel(%arg0: i32, %arg1: memref<24x128xf32, #tpu.memory_space<vmem>>, %arg2: memref<128x8xf32, #tpu.memory_space<vmem>>, %arg3: memref<24x1xf32, #tpu.memory_space<vmem>>) attributes {dimension_semantics = [#tpu.dimension_semantics<parallel>], iteration_bounds = array<i64: 2>, scalar_prefetch = 0 : i64, scratch_operands = 0 : i64, tpu.core_type = #tpu.core_type<tc>, window_params = [{transform_indices = @transform_0, window_bounds = array<i64: 24, 128>}, {pipeline_mode = #tpu.pipeline_mode<synchronous>, transform_indices = @transform_1, window_bounds = array<i64: 128, 8>}, {transform_indices = @transform_2, window_bounds = array<i64: 24, 1>}]} {
    %c0 = arith.constant 0 : index
    %c0_0 = arith.constant 0 : index
    %0 = vector.load %arg1[%c0, %c0_0] : memref<24x128xf32, #tpu.memory_space<vmem>>, vector<24x128xf32>
    %c0_1 = arith.constant 0 : index
    %c0_2 = arith.constant 0 : index
    %1 = vector.load %arg2[%c0_1, %c0_2] : memref<128x8xf32, #tpu.memory_space<vmem>>, vector<128x8xf32>
    %cst = arith.constant dense<0.000000e+00> : vector<24x8xf32>
    %2 = tpu.matmul %0, %1, %cst {dimension_numbers = #tpu.dot_dimension_numbers<[1], [0], [0], [1], [0, 0, 1, 1], [], []>} : vector<24x128xf32>, vector<128x8xf32>, vector<24x8xf32> -> vector<24x8xf32>
    %3 = vector.extract_strided_slice %2 {offsets = [0, 0], sizes = [24, 1], strides = [1, 1]} : vector<24x8xf32> to vector<24x1xf32>
    %4 = math.absf %3 : vector<24x1xf32>
    %cst_3 = arith.constant 1.562500e-02 : f32
    %5 = vector.broadcast %cst_3 : f32 to vector<24x1xf32>
    %6 = arith.mulf %4, %5 : vector<24x1xf32>
    %c0_4 = arith.constant 0 : index
    %c0_5 = arith.constant 0 : index
    %7 = vector.load %arg3[%c0_4, %c0_5] : memref<24x1xf32, #tpu.memory_space<vmem>>, vector<24x1xf32>
    tpu.vector_store %arg3[%c0_4, %c0_5], %6 {strides = array<i32>} : memref<24x1xf32, #tpu.memory_space<vmem>>, vector<24x1xf32>,
    return
  }
  func.func @transform_0(%arg0: i32) -> (i32, i32) {
    %c0_i32 = arith.constant 0 : i32
    %c0_i32_0 = arith.constant 0 : i32
    return %arg0, %c0_i32 : i32, i32
  }
  func.func @transform_1(%arg0: i32) -> (i32, i32) {
    %c0_i32 = arith.constant 0 : i32
    %c0_i32_0 = arith.constant 0 : i32
    %c0_i32_1 = arith.constant 0 : i32
    return %c0_i32, %c0_i32_0 : i32, i32
  }
  func.func @transform_2(%arg0: i32) -> (i32, i32) {
    %c0_i32 = arith.constant 0 : i32
    %c0_i32_0 = arith.constant 0 : i32
    return %arg0, %c0_i32 : i32, i32
  }
}

</mosaic_0001>

<bundles_post_ra>
// kernel: tpu_custom_call.1
= control target key start
LH: loop header
LB: loop body
LE: loop exit
PB: predicated region body
PF: predicated region fallthrough
CT: control target
= control target key end

     0   :  { %s820_s9 = smov 0   ;;  %s822_s10 = smov 0   ;;  %s950_s0 = inlined_call_operand.vmem [shape: f32[40,128], index: 0, kind: input, shape index: {}]   ;;  %s951_s1 = inlined_call_operand.vmem [shape: f32[128,8], index: 1, kind: input, shape index: {}]   ;;  %s952_s2 = inlined_call_operand.vmem [shape: f32[40,1], index: 2, kind: output, shape index: {}]  }
   0x1   :  { %s824_s11 = smov 0  }
   0x2 LB: > { %s833_s12 = sadd.s32 4294967295, %s768_s11   ;;  %s835_s13 = sadd.s32 1, %s768_s11   ;;  %s768_s11 = sphi %s824_s11, %s956_s11   ;;  %s764_s10 = sphi %s822_s10, %s955_s10   ;;  %s760_s9 = sphi %s820_s9, %s954_s9  }
   0x3   : > { %s63_s14 = ssub.s32 %s768_s11, %s835_s13  ;;  %s66_s15 = sadd.s32 1, %s764_s10 }
   0x4   : > { %p64_p0 = scmp.eq.s32.totalorder %s63_s14, 0  ;;  %p76_p1 = scmp.ne.s32.totalorder %s764_s10, %s760_s9 }
   0x5   : > { %p77_p2 = scmp.eq.s32.totalorder %s833_s12, 1  ;;  %p502_p3 = scmp.ge.s32.totalorder %s768_s11, 1 }
   0x6   : > { %s843_s16 = scalar_select %p64_p0, %s764_s10, %s66_s15  }
   0x7   : > { %p845_p4 = por %p77_p2, %p76_p1  ;;  %p121_p5 = scmp.lt.s32.totalorder %s768_s11, 3 }
   0x9   : > { %p122_p6 = pnand %p502_p3, %p121_p5 }
   0xa   : > { %v168_v0 = vld [vmem:[%s951_s1] sm:$0xff] (!%p122_p6)  ;;  %v169_v1 = vld [vmem:[%s951_s1 + $0x8] sm:$0xff] (!%p122_p6)  ;;  %v170_v2 = vld [vmem:[%s951_s1 + $0x10] sm:$0xff] (!%p122_p6)  ;;  %v802_v3 = vmov (!%p122_p6), 0.0|0.0   ;;  %vm803_vm0 = vmmov (!%p122_p6), 0   ;;  %v804_v6 = vmov (!%p122_p6), 0.0  }
   0xb   : > { %125 = sbr.rel (%p122_p6) target bundleno = 326 (0x146), region = 28  ;;  %601 = vmatprep.subr.bf16.mxu1 (!%p122_p6), %v802_v3  ;;  %v578_v4 = vpack.c.bf16 (!%p122_p6), %v169_v1, %v168_v0  ;;  %577 = vmatprep.subr.bf16.mxu0 (!%p122_p6), %v802_v3  ;;  %v171_v5 = vld [vmem:[%s951_s1 + $0x18] sm:$0xff] (!%p122_p6)  ;;  %v172_v8 = vld [vmem:[%s951_s1 + $0x20] sm:$0xff] (!%p122_p6)  ;;  %v173_v9 = vld [vmem:[%s951_s1 + $0x28] sm:$0xff] (!%p122_p6)  ;;  %s143_s6 = sand.u32 (!%p122_p6), 1, %s760_s9   ;;  %vm270_vm1 = vcmask (!%p122_p6), 7168  }
   0xc   : > { %571 = vmatprep.mubr.msk.f32.mxu1 (!%p122_p6), %vm803_vm0, %v804_v6  ;;  %568 = vmatprep.mubr.msk.f32.mxu0 (!%p122_p6), %vm803_vm0, %v804_v6  ;;  %v581_v7 = vpack.c.bf16 (!%p122_p6), %v171_v5, %v170_v2  ;;  %v584_v10 = vpack.c.bf16 (!%p122_p6), %v173_v9, %v172_v8  ;;  %v174_v11 = vld [vmem:[%s951_s1 + $0x30] sm:$0xff] (!%p122_p6)  ;;  %v175_v12 = vld [vmem:[%s951_s1 + $0x38] sm:$0xff] (!%p122_p6)  ;;  %v176_v14 = vld [vmem:[%s951_s1 + $0x40] sm:$0xff] (!%p122_p6)  ;;  %s882_s14 = smul.u32 (!%p122_p6), 3, %s833_s12 }
   0xd   : > { %609 = vmatpush3.bf16.msra.mxu1 (!%p122_p6), %v578_v4  ;;  %579 = vmatpush3.bf16.msra.mxu0 (!%p122_p6), %v578_v4  ;;  %v587_v13 = vpack.c.bf16 (!%p122_p6), %v175_v12, %v174_v11  ;;  %v177_v15 = vld [vmem:[%s951_s1 + $0x48] sm:$0xff] (!%p122_p6)  ;;  %v178_v17 = vld [vmem:[%s951_s1 + $0x50] sm:$0xff] (!%p122_p6)  ;;  %v179_v18 = vld [vmem:[%s951_s1 + $0x58] sm:$0xff] (!%p122_p6)  ;;  %s617_s7 = smul.u32 (!%p122_p6), 24, %s143_s6 }
   0xe   : > { %602 = vmatprep.subr.bf16.mxu1 (!%p122_p6), %v802_v3  ;;  %580 = vmatprep.subr.bf16.mxu0 (!%p122_p6), %v802_v3  ;;  %v590_v16 = vpack.c.bf16 (!%p122_p6), %v177_v15, %v176_v14  ;;  %p151_p7 = scmp.lt.s32.totalorder (!%p122_p6), %s882_s14, 4  ;;  %v593_v19 = vpack.c.bf16 (!%p122_p6), %v179_v18, %v178_v17  ;;  %v180_v20 = vld [vmem:[%s951_s1 + $0x60] sm:$0xff] (!%p122_p6)  ;;  %v181_v21 = vld [vmem:[%s951_s1 + $0x68] sm:$0xff] (!%p122_p6)  ;;  %v182_v23 = vld [vmem:[%s951_s1 + $0x70] sm:$0xff] (!%p122_p6) }
   0xf   : > { %v596_v22 = vpack.c.bf16 (!%p122_p6), %v181_v21, %v180_v20  ;;  %v183_v24 = vld [vmem:[%s951_s1 + $0x78] sm:$0xff] (!%p122_p6)  ;;  %s909_s8 = scalar_lea.vmem (!%p122_p6), [#allocation2], %s617_s7  }
  0x10   : > { %v599_v25 = vpack.c.bf16 (!%p122_p6), %v183_v24, %v182_v23 }
  0x11   : > { %610 = vmatpush3.bf16.msra.mxu1 (!%p122_p6), %v581_v7  ;;  %582 = vmatpush3.bf16.msra.mxu0 (!%p122_p6), %v581_v7 }
  0x12   : > { %603 = vmatprep.subr.bf16.mxu1 %v802_v3  ;;  %583 = vmatprep.subr.bf16.mxu0 %v802_v3  ;;  %s152_s25 = scalar_select %p151_p7, %s882_s14, 4 }
  0x13   : > { %s282_s9 = ssub.s32 (%p845_p4), 5, %s882_s14  ;;  %s516_s11 = smul.u32 (%p845_p4), 24, %s833_s12 }
  0x14   : > { %s503_s30 = sshll.u32 %s152_s25, 3  ;;  %p283_p8 = scmp.lt.s32.totalorder (%p845_p4), %s282_s9, 3 }
  0x15   : > { %611 = vmatpush3.bf16.msra.mxu1 %v584_v10  ;;  %585 = vmatpush3.bf16.msra.mxu0 %v584_v10  ;;  %s154_s5 = scalar_lea.vmem %s950_s0, %s503_s30  ;;  %s921_s19 = scalar_lea.vmem (%p845_p4), %s952_s2, %s516_s11  }
  0x16   : > { %604 = vmatprep.subr.bf16.mxu1 %v802_v3  ;;  %586 = vmatprep.subr.bf16.mxu0 %v802_v3  ;;  %v166_v26 = vld [vmem:[%s154_s5 + $0x8] sm:$0xff]  ;;  %v165_v27 = vld [vmem:[%s154_s5] sm:$0xff]  ;;  %v167_v28 = vld [vmem:[%s154_s5 + $0x10] sm:$0xff] }
  0x19   : > { %612 = vmatpush3.bf16.msra.mxu1 %v587_v13  ;;  %588 = vmatpush3.bf16.msra.mxu0 %v587_v13 }
  0x1a   : > { %605 = vmatprep.subr.bf16.mxu1 %v802_v3  ;;  %589 = vmatprep.subr.bf16.mxu0 %v802_v3 }
  0x1d   : > { %613 = vmatpush3.bf16.msra.mxu1 %v590_v16  ;;  %591 = vmatpush3.bf16.msra.mxu0 %v590_v16 }
  0x1e   : > { %606 = vmatprep.subr.bf16.mxu1 %v802_v3  ;;  %592 = vmatprep.subr.bf16.mxu0 %v802_v3 }
  0x21   : > { %614 = vmatpush3.bf16.msra.mxu1 %v593_v19  ;;  %594 = vmatpush3.bf16.msra.mxu0 %v593_v19 }
  0x22   : > { %607 = vmatprep.subr.bf16.mxu1 %v802_v3  ;;  %595 = vmatprep.subr.bf16.mxu0 %v802_v3 }
  0x25   : > { %615 = vmatpush3.bf16.msra.mxu1 %v596_v22  ;;  %597 = vmatpush3.bf16.msra.mxu0 %v596_v22 }
  0x26   : > { %608 = vmatprep.subr.bf16.mxu1 %v802_v3  ;;  %598 = vmatprep.subr.bf16.mxu0 %v802_v3 }
  0x29   : > { %616 = vmatpush3.bf16.msra.mxu1 %v599_v25  ;;  %600 = vmatpush3.bf16.msra.mxu0 %v599_v25 }
  0x2c   : > { %572 = vmatmul.mubr.f32.vlgmr.msra.gmra.mrb[0].mxu1 %v166_v26  ;;  %569 = vmatmul.mubr.f32.vlgmr.msra.gmra.mrb[0].mxu0 %v165_v27 }
  0x2d   : > { %574 = vmatprep.mubr.msk.f32.mxu1 %vm803_vm0, %v804_v6 }
  0x30   : > { %575 = vmatmul.mubr.f32.gmra.mrb[2].mxu1 %v167_v28 }
  0xff   : > { %v255_v29 = vpop.f32.mrb[0].mxu1  ;;  %v250_v30 = vpop.f32.mrb[0].mxu0 }
 0x100   : > { %v265_v31 = vand.u32 2147483647, %v255_v29  ;;  %v573_v32 = vpop.f32.mrb[1].mxu1  ;;  %v264_v33 = vand.u32 2147483647, %v250_v30  ;;  %v570_v34 = vpop.f32.mrb[1].mxu0 }
 0x102   : > { %v268_v35 = vmul.f32 0.015625, %v265_v31  ;;  %v267_v36 = vmul.f32 0.015625, %v264_v33  ;;  %280 = sbr.rel (!%p845_p4) target bundleno = 326 (0x146), region = 32 }
 0x103   : > { %v260_v37 = vpop.f32.mrb[2].mxu1 }
 0x104   : > { %272 = vst.msk [vmem:[%s909_s8 + $0x8] sm:$0xff] %vm270_vm1, %v268_v35  ;;  %271 = vst.msk [vmem:[%s909_s8] sm:$0xff] %vm270_vm1, %v267_v36  ;;  %v266_v38 = vand.u32 2147483647, %v260_v37  ;;  %v576_v39 = vpop.f32.mrb[3].mxu1 }
 0x106   : > { %v269_v40 = vmul.f32 0.015625, %v266_v38 }
 0x108   : > { %273 = vst.msk [vmem:[%s909_s8 + $0x10] sm:$0xff] %vm270_vm1, %v269_v40 }
 0x109   : > { %s958_s9 = smov (!%p283_p8, %s282_s9), 3 }
 0x10a   : > { %s504_s20 = sshll.u32 %s958_s9, 7 }
 0x10b   : > { %p507_p9 = scmp.eq.s32.totalorder %s504_s20, 0 }
 0x10c   : > { %710 = sdivrem.u32 (!%p507_p9), %s958_s9, 3 }
 0x10d   : > { %291 = sbr.rel (%p507_p9) target bundleno = 326 (0x146), region = 36 }
 0x115   : > { %s927_s17 = spop.drf %710 }
 0x116   : > { %p508_p10 = scmp.le.s32.totalorder %s927_s17, 0 }
 0x117   : > { %s770_s12 = smov (!%p508_p10), %s921_s19   ;;  %s774_s14 = smov (!%p508_p10), %s909_s8  }
 0x118   : > { %455 = sbr.rel (%p508_p10) target bundleno = 297 (0x129), region = 112  ;;  %s778_s21 = smov (!%p508_p10), 0  }
 0x119   : > { %s782_s22 = smov (!%p508_p10), 0  }
 0x11f LB: >> { %v359_v41 = vld [vmem:[%s776_s14] sm:$0xff]  ;;  %v361_v42 = vld [vmem:[%s776_s14 + $0x8] sm:$0xff]  ;;  %v363_v43 = vld [vmem:[%s776_s14 + $0x10] sm:$0xff]  ;;  %s365_s23 = sadd.s32 1, %s780_s21  ;;  %s353_s22 = sadd.s32 1, %s784_s22   ;;  %s784_s22 = sphi %s782_s22, %s353_s22   ;;  %s780_s21 = sphi %s778_s21, %s779_s21   ;;  %s776_s14 = sphi %s774_s14, %s370_s14   ;;  %s772_s12 = sphi %s770_s12, %s371_s12  }
 0x120   : >> { %360 = vst [vmem:[%s772_s12] sm:$0xff] %v359_v41  ;;  %362 = vst [vmem:[%s772_s12 + $0x8] sm:$0xff] %v361_v42  ;;  %p366_p11 = scmp.ge.s32.totalorder %s365_s23, %s927_s17  ;;  %p352_p12 = scmp.ge.s32.totalorder %s353_s22, %s927_s17 }
 0x121   : >> { %364 = vst [vmem:[%s772_s12 + $0x10] sm:$0xff] %v363_v43 }
 0x122   : >> { %s960_s23 = smov (%p366_p11, %s365_s23), 0  ;;  %355 = sbr.rel (!%p352_p12) target bundleno = 287 (0x11f), region = 118 }
 0x123   : >> { %s368_s24 = smul.u32 24, %s960_s23  ;;  %s779_s21 = smov %s960_s23  }
 0x125   : >> { %s370_s14 = scalar_lea.vmem %s909_s8, %s368_s24 [#allocation2]   ;;  %s371_s12 = scalar_lea.vmem %s921_s19, %s368_s24  }
 0x129 PF: > { %712 = sdivrem.u32 %s958_s9, 3 }
 0x12a   : > { %s509_s25 = smul.u32 24, %s927_s17 }
 0x12c   : > { %s376_s26 = scalar_lea.vmem %s909_s8, %s509_s25 [#allocation2]   ;;  %s378_s27 = scalar_lea.vmem %s921_s19, %s509_s25  }
 0x132   : > { %s713_s28 = spop.drf %712 }
 0x133   : > { %p511_p13 = scmp.le.s32.totalorder %s713_s28, 0 }
 0x134   : > { %s786_s29 = smov (!%p511_p13), %s378_s27   ;;  %s790_s30 = smov (!%p511_p13), %s376_s26  }
 0x135   : > { %469 = sbr.rel (%p511_p13) target bundleno = 326 (0x146), region = 123  ;;  %s794_s3 = smov (!%p511_p13), 0  }
 0x136   : > { %s798_s4 = smov (!%p511_p13), 0  }
 0x13c LB: >> { %v388_v44 = vld [vmem:[%s792_s30] sm:$0xff]  ;;  %s390_s5 = sadd.s32 1, %s796_s3  ;;  %s382_s4 = sadd.s32 1, %s800_s4   ;;  %s800_s4 = sphi %s798_s4, %s382_s4   ;;  %s796_s3 = sphi %s794_s3, %s795_s3   ;;  %s792_s30 = sphi %s790_s30, %s395_s30   ;;  %s788_s29 = sphi %s786_s29, %s396_s29  }
 0x13d   : >> { %389 = vst [vmem:[%s788_s29] sm:$0xff] %v388_v44  ;;  %p391_p0 = scmp.ge.s32.totalorder %s390_s5, %s713_s28  ;;  %p381_p1 = scmp.ge.s32.totalorder %s382_s4, %s713_s28 }
 0x13f   : >> { %s962_s5 = smov (%p391_p0, %s390_s5), 0  ;;  %384 = sbr.rel (!%p381_p1) target bundleno = 316 (0x13c), region = 129 }
 0x140   : >> { %s512_s6 = sshll.u32 %s962_s5, 3  ;;  %s795_s3 = smov %s962_s5  }
 0x141   : >> { %s395_s30 = scalar_lea.vmem %s376_s26, %s512_s6 [#allocation2]   ;;  %s396_s29 = scalar_lea.vmem %s378_s27, %s512_s6  }
 0x146 PF: > { %p9_p2 = scmp.ge.s32.totalorder %s835_s13, 4   ;;  %s954_s9 = smov %s764_s10 }
 0x147   : > { %s955_s10 = smov %s843_s16  ;;  %s956_s11 = smov %s835_s13 }
 0x148   :  { %11 = sbr.rel (!%p9_p2) target bundleno = 2 (0x2), region = 140 }

</bundles_post_ra>
